<compile_context>
chip_gen: v5e
topology: v5e:2x2
jax: 0.10.0
libtpu: 0.0.40
codegen_flags: <defaults>
</compile_context>

<pallas_src>
import functools
import math

import jax
import jax.numpy as jnp
from jax.experimental import pallas as pl
from jax.experimental.pallas import tpu as pltpu


def _round_up(x, m):
    return ((x + m - 1) // m) * m


# ----------------------------------------------------------------------------
# Exact (erf-based) GELU, matching torch.nn.GELU() default.
# erf uses the Abramowitz & Stegun 7.1.26 rational approximation (max abs
# error 1.5e-7) with only ops that lower in Mosaic (mul/add/abs/where/exp and
# pl.reciprocal, which runs on the EUP slot).
# ----------------------------------------------------------------------------
def _erf(x):
    p = 0.3275911
    a1, a2, a3, a4, a5 = (0.254829592, -0.284496736, 1.421413741,
                          -1.453152027, 1.061405429)
    ax = jnp.abs(x)
    # Reciprocal on the EUP (approx=False keeps full f32 accuracy).
    t = pl.reciprocal(1.0 + p * ax, approx=False)
    poly = ((((a5 * t + a4) * t + a3) * t + a2) * t + a1) * t
    y = 1.0 - poly * jnp.exp(-ax * ax)
    return jnp.where(x < 0, -y, y)


def _gelu_exact(x):
    return 0.5 * x * (1.0 + _erf(x * (1.0 / math.sqrt(2.0))))


# ----------------------------------------------------------------------------
# Fused FFN kernel for one (row-tile i, hidden-tile j) grid point.
#   x_ref : (tm, in_dim)      w1_ref: (in_dim, th)     b1_ref: (1, th)
#   w2_ref: (th, out_dim)     b2_ref: (1, out_dim)     o_ref : (tm, out_dim)
#   scratch (optional): fp32 VMEM accumulator (tm, out_dim) — only allocated
#   when the output dtype is not f32; otherwise o_ref itself accumulates.
# Grid axis 1 (hidden tiles) is the reduction axis of the second matmul.
# The hidden block is processed in chunks of `hidden_chunk` columns so the
# fp32 GELU temporaries stay small even when th == mlp_dim (weight-resident).
# ----------------------------------------------------------------------------
def _mlp_block_kernel(x_ref, w1_ref, b1_ref, w2_ref, b2_ref, o_ref, *scratch,
                      hidden_chunk):
    acc = scratch[0] if scratch else o_ref
    j = pl.program_id(1)

    @pl.when(j == 0)
    def _():
        acc[...] = jnp.zeros(acc.shape, dtype=acc.dtype)

    x = x_ref[...]
    th = w1_ref.shape[1]
    n_chunks = th // hidden_chunk
    for c in range(n_chunks):
        lo = c * hidden_chunk
        hi = lo + hidden_chunk
        # fc1 partial (this hidden chunk) + bias + exact GELU, in fp32.
        h = jnp.dot(x, w1_ref[:, lo:hi], preferred_element_type=jnp.float32)
        h = _gelu_exact(h + b1_ref[:, lo:hi].astype(jnp.float32))
        # TODO(synk): dropout1 on `h` is identity (eval semantics).
        # fc2 partial contraction over this hidden chunk, accumulated in fp32.
        acc[...] += jnp.dot(h.astype(w2_ref.dtype), w2_ref[lo:hi, :],
                            preferred_element_type=jnp.float32)

    # Epilogue: add fc2 bias once and store the lane-dense output tile.
    @pl.when(j == pl.num_programs(1) - 1)
    def _():
        o_ref[...] = (acc[...]
                      + b2_ref[...].astype(jnp.float32)).astype(o_ref.dtype)
        # TODO(synk): dropout2 on the output is identity (eval semantics).


def _hidden_chunk_for(th):
    for c in (512, 256, 128):
        if th % c == 0:
            return c
    return th


def mlp_block_forward(x2d, w1, b1, w2, b2, *, tm_target=512,
                      vmem_budget_bytes=36 * 1024 * 1024,
                      vmem_limit_bytes=48 * 1024 * 1024):
    """y = GELU(x2d @ w1 + b1) @ w2 + b2 as a single fused Pallas kernel.

    x2d: (M, in_dim)   w1: (in_dim, mlp_dim)   b1: (mlp_dim,)
    w2: (mlp_dim, out_dim)   b2: (out_dim,)
    """
    m, in_dim = x2d.shape
    mlp_dim, out_dim = w2.shape
    assert w1.shape == (in_dim, mlp_dim)
    assert b1.shape == (mlp_dim,) and b2.shape == (out_dim,)

    out_dtype = x2d.dtype
    if x2d.dtype != w1.dtype:
        # Keep both MXU operands in the weight dtype (e.g. bf16 fast path).
        x2d = x2d.astype(w1.dtype)
    w_bytes = jnp.dtype(w1.dtype).itemsize
    x_bytes = jnp.dtype(x2d.dtype).itemsize
    out_bytes = jnp.dtype(out_dtype).itemsize

    # ----- row tile: big tiles, pad M instead of shrinking tm -----
    if m >= 2 * tm_target:
        tm = tm_target
    elif m > 256:
        # Two row tiles so both v7x TensorCores get work.
        tm = _round_up(-(-m // 2), 128)
    else:
        tm = _round_up(m, 8)
    m_pad = _round_up(m, tm)

    # ----- hidden tile: prefer full mlp_dim (weights VMEM-resident) -----
    def _vmem_estimate(th):
        hc = _hidden_chunk_for(th)
        b = 2 * tm * in_dim * x_bytes            # x tile (double buffered)
        b += 2 * in_dim * th * w_bytes           # W1 block
        b += 2 * 8 * th * w_bytes                # b1 (sublane padded)
        b += 2 * th * out_dim * w_bytes          # W2 block
        b += 2 * 8 * out_dim * w_bytes           # b2
        b += 2 * tm * out_dim * out_bytes        # output tile
        b += tm * out_dim * 4                    # fp32 accumulator (worst case)
        b += 4 * tm * hc * 4                     # fp32 GELU temporaries
        return b

    candidates = [mlp_dim] + [c for c in (2048, 1024, 512, 256, 128)
                              if mlp_dim % c == 0 and c < mlp_dim]
    th = None
    for cand in candidates:
        if _vmem_estimate(cand) <= vmem_budget_bytes:
            th = cand
            break
    if th is None:
        th = candidates[-1]
    hc = _hidden_chunk_for(th)

    grid = (m_pad // tm, mlp_dim // th)

    # Accumulate directly into the resident output block when it is f32;
    # otherwise use an fp32 VMEM scratch accumulator.
    acc_in_out = (jnp.dtype(out_dtype) == jnp.dtype(jnp.float32))
    scratch_shapes = [] if acc_in_out else [pltpu.VMEM((tm, out_dim),
                                                       jnp.float32)]

    if m_pad != m:
        x2d = jnp.pad(x2d, ((0, m_pad - m), (0, 0)))

    flops = 2 * m_pad * mlp_dim * (in_dim + out_dim)
    bytes_accessed = (m_pad * in_dim * x_bytes
                      + (in_dim * mlp_dim + mlp_dim) * w_bytes
                      + (mlp_dim * out_dim + out_dim) * w_bytes
                      + m_pad * out_dim * out_bytes)
    cost = pl.CostEstimate(flops=flops, transcendentals=m_pad * mlp_dim,
                           bytes_accessed=bytes_accessed)

    y = pl.pallas_call(
        functools.partial(_mlp_block_kernel, hidden_chunk=hc),
        out_shape=jax.ShapeDtypeStruct((m_pad, out_dim), out_dtype),
        grid_spec=pltpu.PrefetchScalarGridSpec(
            num_scalar_prefetch=0,
            grid=grid,
            in_specs=[
                # x row tile: block index constant across the hidden axis,
                # so it is DMA'd once per row tile.
                pl.BlockSpec((tm, in_dim), lambda i, j: (i, 0)),
                # W1 / W2 blocks: when th == mlp_dim the block index is
                # constant -> weights are DMA'd once for the whole kernel.
                pl.BlockSpec((in_dim, th), lambda i, j: (0, j)),   # W1 cols
                pl.BlockSpec((1, th), lambda i, j: (0, j)),        # b1
                pl.BlockSpec((th, out_dim), lambda i, j: (j, 0)),  # W2 rows
                pl.BlockSpec((1, out_dim), lambda i, j: (0, 0)),   # b2
            ],
            # Output block constant across the hidden (reduction) axis:
            # stays resident in VMEM, written back once per row tile.
            out_specs=pl.BlockSpec((tm, out_dim), lambda i, j: (i, 0)),
            scratch_shapes=scratch_shapes,
        ),
        compiler_params=pltpu.CompilerParams(
            dimension_semantics=("parallel", "arbitrary"),
            vmem_limit_bytes=vmem_limit_bytes,
        ),
        cost_estimate=cost,
    )(x2d, w1, b1.reshape(1, mlp_dim), w2, b2.reshape(1, out_dim))

    return y[:m] if m_pad != m else y


# ----------------------------------------------------------------------------
# Module wrapper mirroring the PyTorch MlpBlock (forward pass only).
# ----------------------------------------------------------------------------
class MlpBlockPallas:
    def __init__(self, in_dim, mlp_dim, out_dim, dropout_rate=0.1, *,
                 key, dtype=jnp.float32):
        self.in_dim, self.mlp_dim, self.out_dim = in_dim, mlp_dim, out_dim
        self.dropout_rate = dropout_rate  # identity in this (eval) forward
        k1, k2, k3, k4 = jax.random.split(key, 4)
        # torch.nn.Linear default init: U(-1/sqrt(fan_in), 1/sqrt(fan_in)).
        # Weights stored as (d_in, d_out) so y = x @ W + b == x @ weight.T + b.
        bnd1 = 1.0 / math.sqrt(in_dim)
        bnd2 = 1.0 / math.sqrt(mlp_dim)
        self.w1 = jax.random.uniform(k1, (in_dim, mlp_dim), minval=-bnd1,
                                     maxval=bnd1, dtype=jnp.float32).astype(dtype)
        self.b1 = jax.random.uniform(k2, (mlp_dim,), minval=-bnd1,
                                     maxval=bnd1, dtype=jnp.float32).astype(dtype)
        self.w2 = jax.random.uniform(k3, (mlp_dim, out_dim), minval=-bnd2,
                                     maxval=bnd2, dtype=jnp.float32).astype(dtype)
        self.b2 = jax.random.uniform(k4, (out_dim,), minval=-bnd2,
                                     maxval=bnd2, dtype=jnp.float32).astype(dtype)

    def __call__(self, x):
        # x: (..., in_dim)
        lead = x.shape[:-1]
        x2d = x.reshape(-1, self.in_dim)
        y = mlp_block_forward(x2d, self.w1, self.b1, self.w2, self.b2)
        return y.reshape(*lead, self.out_dim)


if __name__ == "__main__":
    def ref_forward(x2d, w1, b1, w2, b2):
        # Pure-JAX f32 reference (exact erf-based GELU, like torch.nn.GELU()).
        x2d, w1, b1, w2, b2 = (a.astype(jnp.float32)
                               for a in (x2d, w1, b1, w2, b2))
        h = x2d @ w1 + b1
        h = jax.nn.gelu(h, approximate=False)
        return h @ w2 + b2

    root = jax.random.PRNGKey(0)
    k_p1, k_x1, k_p2, k_x2, k_p3, k_x3 = jax.random.split(root, 6)

    # Case 1: small transformer FFN shapes (B=2, S=8, in=32, mlp=64, out=32).
    B, S, in_dim, mlp_dim, out_dim = 2, 8, 32, 64, 32
    mlp = MlpBlockPallas(in_dim, mlp_dim, out_dim, dropout_rate=0.1, key=k_p1)
    x = jax.random.normal(k_x1, (B, S, in_dim), dtype=jnp.float32)
    out = mlp(x)
    jax.block_until_ready(out)
    ref = ref_forward(x.reshape(-1, in_dim), mlp.w1, mlp.b1, mlp.w2, mlp.b2
                      ).reshape(B, S, out_dim)
    assert out.shape == (B, S, out_dim)
    assert jnp.allclose(out, ref, atol=2e-4, rtol=2e-4), "case-1 mismatch"

    # Case 2: f32, M not a multiple of the row tile (exercises padding, the
    # 2-row-tile split, the weight-resident hidden path and the accumulate-
    # into-output path).
    M2, in2, mlp2, out2 = 384, 256, 1024, 256
    mlp_big = MlpBlockPallas(in2, mlp2, out2, dropout_rate=0.1, key=k_p2)
    x2 = jax.random.normal(k_x2, (M2, in2), dtype=jnp.float32)
    out2_arr = mlp_big(x2)
    jax.block_until_ready(out2_arr)
    ref2 = ref_forward(x2, mlp_big.w1, mlp_big.b1, mlp_big.w2, mlp_big.b2)
    assert out2_arr.shape == (M2, out2)
    assert jnp.allclose(out2_arr, ref2, atol=1e-3, rtol=1e-3), "case-2 mismatch"

    # Case 3: bf16 weights/activations (MXU fast path, fp32 scratch acc).
    M3, in3, mlp3, out3 = 512, 256, 1024, 256
    mlp_bf = MlpBlockPallas(in3, mlp3, out3, dropout_rate=0.1, key=k_p3,
                            dtype=jnp.bfloat16)
    x3 = jax.random.normal(k_x3, (M3, in3), dtype=jnp.float32
                           ).astype(jnp.bfloat16)
    out3_arr = mlp_bf(x3)
    jax.block_until_ready(out3_arr)
    ref3 = ref_forward(x3, mlp_bf.w1, mlp_bf.b1, mlp_bf.w2, mlp_bf.b2)
    assert out3_arr.shape == (M3, out3)
    assert jnp.allclose(out3_arr.astype(jnp.float32), ref3,
                        atol=5e-2, rtol=5e-2), "case-3 mismatch"

    print("KERNEL_OK")
</pallas_src>

<mosaic_0001>
module attributes {stable_mosaic.version = 11 : i64} {
  func.func @_mlp_block_kernel(%arg0: i32, %arg1: i32, %arg2: memref<16x32xf32, #tpu.memory_space<vmem>>, %arg3: memref<32x64xf32, #tpu.memory_space<vmem>>, %arg4: memref<1x64xf32, #tpu.memory_space<vmem>>, %arg5: memref<64x32xf32, #tpu.memory_space<vmem>>, %arg6: memref<1x32xf32, #tpu.memory_space<vmem>>, %arg7: memref<16x32xf32, #tpu.memory_space<vmem>>) attributes {dimension_semantics = [#tpu.dimension_semantics<parallel>, #tpu.dimension_semantics<arbitrary>], iteration_bounds = array<i64: 1, 1>, scalar_prefetch = 0 : i64, scratch_operands = 0 : i64, tpu.core_type = #tpu.core_type<tc>, window_params = [{transform_indices = @transform_0, window_bounds = array<i64: 16, 32>}, {transform_indices = @transform_1, window_bounds = array<i64: 32, 64>}, {transform_indices = @transform_2, window_bounds = array<i64: 1, 64>}, {transform_indices = @transform_3, window_bounds = array<i64: 64, 32>}, {pipeline_mode = #tpu.pipeline_mode<synchronous>, transform_indices = @transform_4, window_bounds = array<i64: 1, 32>}, {transform_indices = @transform_5, window_bounds = array<i64: 16, 32>}]} {
    %c0_i32 = arith.constant 0 : i32
    %0 = arith.cmpi eq, %arg1, %c0_i32 : i32
    %1 = arith.extui %0 : i1 to i32
    %c0_i32_0 = arith.constant 0 : i32
    %2 = arith.cmpi ne, %1, %c0_i32_0 : i32
    scf.if %2 {
      %cst_29 = arith.constant 0.000000e+00 : f32
      %56 = vector.broadcast %cst_29 : f32 to vector<16x32xf32>
      %c0_30 = arith.constant 0 : index
      %c0_31 = arith.constant 0 : index
      %57 = vector.load %arg7[%c0_30, %c0_31] : memref<16x32xf32, #tpu.memory_space<vmem>>, vector<16x32xf32>
      tpu.vector_store %arg7[%c0_30, %c0_31], %56 {strides = array<i32>} : memref<16x32xf32, #tpu.memory_space<vmem>>, vector<16x32xf32>,
    } else {
    }
    %c0 = arith.constant 0 : index
    %c0_1 = arith.constant 0 : index
    %3 = vector.load %arg2[%c0, %c0_1] : memref<16x32xf32, #tpu.memory_space<vmem>>, vector<16x32xf32>
    %c0_2 = arith.constant 0 : index
    %c0_3 = arith.constant 0 : index
    %4 = vector.load %arg3[%c0_2, %c0_3] : memref<32x64xf32, #tpu.memory_space<vmem>>, vector<32x64xf32>
    %cst = arith.constant dense<0.000000e+00> : vector<16x64xf32>
    %5 = tpu.matmul %3, %4, %cst {dimension_numbers = #tpu.dot_dimension_numbers<[1], [0], [0], [1], [0, 0, 1, 1], [], []>} : vector<16x32xf32>, vector<32x64xf32>, vector<16x64xf32> -> vector<16x64xf32>
    %c0_4 = arith.constant 0 : index
    %c0_5 = arith.constant 0 : index
    %6 = vector.load %arg4[%c0_4, %c0_5] : memref<1x64xf32, #tpu.memory_space<vmem>>, vector<1x64xf32>
    %7 = vector.broadcast %6 : vector<1x64xf32> to vector<16x64xf32>
    %8 = arith.addf %5, %7 : vector<16x64xf32>
    %cst_6 = arith.constant 5.000000e-01 : f32
    %9 = vector.broadcast %cst_6 : f32 to vector<16x64xf32>
    %10 = arith.mulf %9, %8 : vector<16x64xf32>
    %cst_7 = arith.constant 0.707106769 : f32
    %11 = vector.broadcast %cst_7 : f32 to vector<16x64xf32>
    %12 = arith.mulf %8, %11 : vector<16x64xf32>
    %13 = math.absf %12 : vector<16x64xf32>
    %cst_8 = arith.constant 0.327591091 : f32
    %14 = vector.broadcast %cst_8 : f32 to vector<16x64xf32>
    %15 = arith.mulf %14, %13 : vector<16x64xf32>
    %cst_9 = arith.constant 1.000000e+00 : f32
    %16 = vector.broadcast %cst_9 : f32 to vector<16x64xf32>
    %17 = arith.addf %16, %15 : vector<16x64xf32>
    %18 = tpu.reciprocal %17 : vector<16x64xf32> -> vector<16x64xf32>
    %cst_10 = arith.constant 1.06140542 : f32
    %19 = vector.broadcast %cst_10 : f32 to vector<16x64xf32>
    %20 = arith.mulf %19, %18 : vector<16x64xf32>
    %cst_11 = arith.constant -1.45315206 : f32
    %21 = vector.broadcast %cst_11 : f32 to vector<16x64xf32>
    %22 = arith.addf %20, %21 : vector<16x64xf32>
    %23 = arith.mulf %22, %18 : vector<16x64xf32>
    %cst_12 = arith.constant 1.42141378 : f32
    %24 = vector.broadcast %cst_12 : f32 to vector<16x64xf32>
    %25 = arith.addf %23, %24 : vector<16x64xf32>
    %26 = arith.mulf %25, %18 : vector<16x64xf32>
    %cst_13 = arith.constant -0.284496725 : f32
    %27 = vector.broadcast %cst_13 : f32 to vector<16x64xf32>
    %28 = arith.addf %26, %27 : vector<16x64xf32>
    %29 = arith.mulf %28, %18 : vector<16x64xf32>
    %cst_14 = arith.constant 0.254829586 : f32
    %30 = vector.broadcast %cst_14 : f32 to vector<16x64xf32>
    %31 = arith.addf %29, %30 : vector<16x64xf32>
    %32 = arith.mulf %31, %18 : vector<16x64xf32>
    %cst_15 = arith.constant 0.000000e+00 : f32
    %33 = vector.broadcast %cst_15 : f32 to vector<16x64xf32>
    %34 = arith.subf %33, %13 : vector<16x64xf32>
    %35 = arith.mulf %34, %13 : vector<16x64xf32>
    %36 = math.exp %35 : vector<16x64xf32>
    %37 = arith.mulf %32, %36 : vector<16x64xf32>
    %cst_16 = arith.constant 1.000000e+00 : f32
    %38 = vector.broadcast %cst_16 : f32 to vector<16x64xf32>
    %39 = arith.subf %38, %37 : vector<16x64xf32>
    %cst_17 = arith.constant 0.000000e+00 : f32
    %40 = vector.broadcast %cst_17 : f32 to vector<16x64xf32>
    %41 = arith.cmpf olt, %12, %40 : vector<16x64xf32>
    %cst_18 = arith.constant 0.000000e+00 : f32
    %42 = vector.broadcast %cst_18 : f32 to vector<16x64xf32>
    %43 = arith.subf %42, %39 : vector<16x64xf32>
    %44 = arith.select %41, %43, %39 : vector<16x64xi1>, vector<16x64xf32>
    %cst_19 = arith.constant 1.000000e+00 : f32
    %45 = vector.broadcast %cst_19 : f32 to vector<16x64xf32>
    %46 = arith.addf %45, %44 : vector<16x64xf32>
    %47 = arith.mulf %10, %46 : vector<16x64xf32>
    %c0_20 = arith.constant 0 : index
    %c0_21 = arith.constant 0 : index
    %48 = vector.load %arg7[%c0_20, %c0_21] : memref<16x32xf32, #tpu.memory_space<vmem>>, vector<16x32xf32>
    %c0_22 = arith.constant 0 : index
    %c0_23 = arith.constant 0 : index
    %49 = vector.load %arg5[%c0_22, %c0_23] : memref<64x32xf32, #tpu.memory_space<vmem>>, vector<64x32xf32>
    %cst_24 = arith.constant dense<0.000000e+00> : vector<16x32xf32>
    %50 = tpu.matmul %47, %49, %cst_24 {dimension_numbers = #tpu.dot_dimension_numbers<[1], [0], [0], [1], [0, 0, 1, 1], [], []>} : vector<16x64xf32>, vector<64x32xf32>, vector<16x32xf32> -> vector<16x32xf32>
    %51 = arith.addf %48, %50 : vector<16x32xf32>
    %c0_25 = arith.constant 0 : index
    %c0_26 = arith.constant 0 : index
    %52 = vector.load %arg7[%c0_25, %c0_26] : memref<16x32xf32, #tpu.memory_space<vmem>>, vector<16x32xf32>
    tpu.vector_store %arg7[%c0_25, %c0_26], %51 {strides = array<i32>} : memref<16x32xf32, #tpu.memory_space<vmem>>, vector<16x32xf32>,
    %c0_i32_27 = arith.constant 0 : i32
    %53 = arith.cmpi eq, %arg1, %c0_i32_27 : i32
    %54 = arith.extui %53 : i1 to i32
    %c0_i32_28 = arith.constant 0 : i32
    %55 = arith.cmpi ne, %54, %c0_i32_28 : i32
    scf.if %55 {
      %c0_29 = arith.constant 0 : index
      %c0_30 = arith.constant 0 : index
      %56 = vector.load %arg7[%c0_29, %c0_30] : memref<16x32xf32, #tpu.memory_space<vmem>>, vector<16x32xf32>
      %c0_31 = arith.constant 0 : index
      %c0_32 = arith.constant 0 : index
      %57 = vector.load %arg6[%c0_31, %c0_32] : memref<1x32xf32, #tpu.memory_space<vmem>>, vector<1x32xf32>
      %58 = vector.broadcast %57 : vector<1x32xf32> to vector<16x32xf32>
      %59 = arith.addf %56, %58 : vector<16x32xf32>
      %c0_33 = arith.constant 0 : index
      %c0_34 = arith.constant 0 : index
      %60 = vector.load %arg7[%c0_33, %c0_34] : memref<16x32xf32, #tpu.memory_space<vmem>>, vector<16x32xf32>
      tpu.vector_store %arg7[%c0_33, %c0_34], %59 {strides = array<i32>} : memref<16x32xf32, #tpu.memory_space<vmem>>, vector<16x32xf32>,
    } else {
    }
    return
  }
  func.func @transform_0(%arg0: i32, %arg1: i32) -> (i32, i32) {
    %c0_i32 = arith.constant 0 : i32
    %c0_i32_0 = arith.constant 0 : i32
    return %arg0, %c0_i32 : i32, i32
  }
  func.func @transform_1(%arg0: i32, %arg1: i32) -> (i32, i32) {
    %c0_i32 = arith.constant 0 : i32
    %c0_i32_0 = arith.constant 0 : i32
    return %c0_i32, %arg1 : i32, i32
  }
  func.func @transform_2(%arg0: i32, %arg1: i32) -> (i32, i32) {
    %c0_i32 = arith.constant 0 : i32
    %c0_i32_0 = arith.constant 0 : i32
    return %c0_i32, %arg1 : i32, i32
  }
  func.func @transform_3(%arg0: i32, %arg1: i32) -> (i32, i32) {
    %c0_i32 = arith.constant 0 : i32
    %c0_i32_0 = arith.constant 0 : i32
    return %arg1, %c0_i32 : i32, i32
  }
  func.func @transform_4(%arg0: i32, %arg1: i32) -> (i32, i32) {
    %c0_i32 = arith.constant 0 : i32
    %c0_i32_0 = arith.constant 0 : i32
    %c0_i32_1 = arith.constant 0 : i32
    return %c0_i32, %c0_i32_0 : i32, i32
  }
  func.func @transform_5(%arg0: i32, %arg1: i32) -> (i32, i32) {
    %c0_i32 = arith.constant 0 : i32
    %c0_i32_0 = arith.constant 0 : i32
    return %arg0, %c0_i32 : i32, i32
  }
}

</mosaic_0001>

<bundles_post_ra>
// kernel: tpu_custom_call.1
= control target key start
LH: loop header
LB: loop body
LE: loop exit
PB: predicated region body
PF: predicated region fallthrough
CT: control target
= control target key end

     0   :  { %s386_s0 = inlined_call_operand.vmem [shape: f32[16,32], index: 0, kind: input, shape index: {}]   ;;  %s387_s1 = inlined_call_operand.vmem [shape: f32[32,64], index: 1, kind: input, shape index: {}]   ;;  %s388_s2 = inlined_call_operand.vmem [shape: f32[1,64], index: 2, kind: input, shape index: {}]   ;;  %s389_s3 = inlined_call_operand.vmem [shape: f32[64,32], index: 3, kind: input, shape index: {}]   ;;  %s390_s4 = inlined_call_operand.vmem [shape: f32[1,32], index: 4, kind: input, shape index: {}]   ;;  %s391_s5 = inlined_call_operand.hbm [shape: f32[16,32], index: 5, kind: output, shape index: {}]  }
   0x1   :  { %v33_v0 = vld [vmem:[%s387_s1 + $0x18] sm:$0xff]  ;;  %v32_v1 = vld [vmem:[%s387_s1 + $0x10] sm:$0xff]  ;;  %v31_v2 = vld [vmem:[%s387_s1 + $0x8] sm:$0xff] }
   0x2   :  { %57 = vmatpush.msra.mxu0 %v33_v0  ;;  %225 = vmatpush.msra.mxu3 %v33_v0 }
   0x4   :  { %58 = vmatpush.msra.mxu0 %v32_v1  ;;  %226 = vmatpush.msra.mxu3 %v32_v1 }
   0x5   :  { %10 = vsyncpa [#allocation3], 0  ;;  %v30_v3 = vld [vmem:[%s387_s1] sm:$0xff]  ;;  %vm25_vm0 = vcmask 261120   ;;  %v29_v5 = vld [vmem:[%s386_s0 + $0x8] sm:$0xff]  ;;  %v277_v51 = vmov 0.0  }
   0x6   :  { %59 = vmatpush.msra.mxu0 %v31_v2  ;;  %227 = vmatpush.msra.mxu3 %v31_v2  ;;  %v28_v4 = vld [vmem:[%s386_s0] sm:$0xff]  ;;  %v155_v7 = vld [vmem:[%s389_s3 + $0x38] sm:$0xff]  ;;  %v154_v8 = vld [vmem:[%s389_s3 + $0x30] sm:$0xff]  ;;  %26 = vst.msk [vmem:[#allocation2] sm:$0xff] %vm25_vm0, %v277_v51  ;;  %vm156_vm10 = vcmask 523264   ;;  %s278_s21 = smov [#allocation2]  }
   0x7   :  { %v241_v6 = vld [vmem:[%s388_s2] ss:$0 sm:$0xff]  ;;  %171 = vmatpush.msra.mxu1 %v155_v7  ;;  %229 = vmatpush.msra.mxu2 %v155_v7  ;;  %v153_v9 = vld [vmem:[%s389_s3 + $0x28] sm:$0xff]  ;;  %v151_v14 = vld [vmem:[%s389_s3 + $0x18] sm:$0xff]  ;;  %27 = vst.msk [vmem:[#allocation2 + $0x8] sm:$0xff] %vm25_vm0, %v277_v51  ;;  %s207_s22 = sshll.u32 %s278_s21, 4  ;;  %s208_s22 = int_to_ptr.vmem [resolvable:$true] %s207_s22 }
   0x8   :  { %60 = vmatpush.msra.mxu0 %v30_v3  ;;  %228 = vmatpush.msra.mxu3 %v30_v3  ;;  %v152_v12 = vld [vmem:[%s389_s3 + $0x20] sm:$0xff]  ;;  %v150_v16 = vld [vmem:[%s389_s3 + $0x10] sm:$0xff]  ;;  %v149_v20 = vld [vmem:[%s389_s3 + $0x8] sm:$0xff]  ;;  %s209_s25 = sshll.u32 %s391_s5, 4  ;;  %s280_s26 = smov 8   ;;  %s210_s25 = int_to_ptr.hbm [resolvable:$true] %s209_s25 }
   0x9   :  { %221 = vmatmul.msk.f32.vlgmr.msra.gmra.mxu0 %vm25_vm0, %v28_v4  ;;  %222 = vmatmul.msk.f32.vlgmr.msra.gmra.mxu3 %vm25_vm0, %v29_v5  ;;  %v148_v23 = vld [vmem:[%s389_s3] sm:$0xff] }
   0xa   :  { %172 = vmatpush.msra.mxu1 %v154_v8  ;;  %230 = vmatpush.msra.mxu2 %v154_v8 }
   0xc   :  { %173 = vmatpush.msra.mxu1 %v153_v9  ;;  %231 = vmatpush.msra.mxu2 %v153_v9 }
   0xe   :  { %174 = vmatpush.msra.mxu1 %v152_v12  ;;  %232 = vmatpush.msra.mxu2 %v152_v12 }
  0x10   :  { %175 = vmatpush.msra.mxu1 %v151_v14  ;;  %233 = vmatpush.msra.mxu2 %v151_v14 }
  0x12   :  { %176 = vmatpush.msra.mxu1 %v150_v16  ;;  %234 = vmatpush.msra.mxu2 %v150_v16 }
  0x14   :  { %177 = vmatpush.msra.mxu1 %v149_v20  ;;  %235 = vmatpush.msra.mxu2 %v149_v20 }
  0x16   :  { %178 = vmatpush.msra.mxu1 %v148_v23  ;;  %236 = vmatpush.msra.mxu2 %v148_v23 }
  0x86   :  { %v62_v10 = vpop.f32.mrf.mxu0 }
  0x87   :  { %v343_v11 = vadd.f32 %v241_v6, %v62_v10 }
  0x89   :  { %v349_v13 = vmul.f32 0.70710677, %v343_v11  ;;  %v68_v16 = vmul.f32 0.5, %v343_v11  ;;  %v242_v11 = vld [vmem:[%s390_s4] ss:$0 sm:$0xff]  ;;  %s279_s4 = smov 128  }
  0x8b   :  { %v72_v15 = vand.u32 2147483647, %v349_v13  ;;  %vm136_vm9 = vcmp.lt.f32.partialorder %v349_v13, 0.0  ;;  %v146_v13 = vld [vmem:[#allocation2] sm:$0xff] }
  0x8c   :  { %v65_v17 = vpop.f32.mrf.mxu3 }
  0x8d   :  { %v74_v18 = vmul.f32 0.3275911, %v72_v15  ;;  %v358_v19 = vadd.f32 %v241_v6, %v65_v17  ;;  %v124_v38 = vsub.f32 0.0, %v72_v15 }
  0x8f   :  { %v76_v21 = vadd.f32 1.0, %v74_v18  ;;  %v364_v22 = vmul.f32 0.70710677, %v358_v19  ;;  %v126_v46 = vmul.f32 %v124_v38, %v72_v15 }
  0x91   :  { %243 = vrcp.f32 %v76_v21  ;;  %v73_v24 = vand.u32 2147483647, %v364_v22  ;;  %v89_v29 = vand.u32 2147483648, %v76_v21  ;;  %vm83_vm1 = vweird.f32 %v76_v21 }
  0x92   :  { %v87_v31 = vand.u32 2147483647, %v76_v21  ;;  %v128_v55 = vmul.f32 1.442695, %v126_v46  ;;  %vm137_vm11 = vcmp.lt.f32.partialorder %v364_v22, 0.0 }
  0x93   :  { %v75_v25 = vmul.f32 0.3275911, %v73_v24  ;;  %v90_v33 = vor.u32 1.1754944e-38, %v89_v29  ;;  %v125_v52 = vsub.f32 0.0, %v73_v24 }
  0x94   :  { %vm88_vm4 = vcmp.eq.f32.partialorder %v87_v31, 8.507059e+37 }
  0x95   :  { %v77_v26 = vadd.f32 1.0, %v75_v25  ;;  %v127_v59 = vmul.f32 %v125_v52, %v73_v24  ;;  %v69_v25 = vmul.f32 0.5, %v358_v19 }
  0x97   :  { %v244_v27 = vpop.eup %243  ;;  %245 = vrcp.f32 %v77_v26  ;;  %v103_v41 = vand.u32 2147483648, %v77_v26  ;;  %v101_v44 = vand.u32 2147483647, %v77_v26  ;;  %vm97_vm6 = vweird.f32 %v77_v26 }
  0x98   :  { %v79_v28 = vmul.f32 %v244_v27, %v76_v21  ;;  %vm84_vm2 = vweird.f32 %v244_v27  ;;  %247 = vpow2.f32 %v128_v55  ;;  %v130_v0 = vmul.f32 1.442695, %v127_v59 }
  0x99   :  { %vm85_vm3 = vmor %vm83_vm1, %vm84_vm2  ;;  %v104_v48 = vor.u32 1.1754944e-38, %v103_v41  ;;  %vm102_vm8 = vcmp.eq.f32.partialorder %v101_v44, 8.507059e+37 }
  0x9a   :  { %v80_v30 = vsub.f32 1.0, %v79_v28  ;;  %249 = vpow2.f32 %v130_v0 }
  0x9c   :  { %v81_v32 = vmul.f32 %v244_v27, %v80_v30 }
  0x9d   :  { %v246_v34 = vpop.eup %245 }
  0x9e   :  { %v82_v35 = vadd.f32 %v244_v27, %v81_v32  ;;  %v93_v36 = vmul.f32 %v246_v34, %v77_v26  ;;  %vm98_vm5 = vweird.f32 %v246_v34  ;;  %v248_v4 = vpop.eup %247  ;;  %v147_v32 = vld [vmem:[#allocation2 + $0x8] sm:$0xff] }
  0x9f   :  { %vm99_vm7 = vmor %vm97_vm6, %vm98_vm5 }
  0xa0   :  { %v86_v37 = vsel %vm85_vm3, %v244_v27, %v82_v35  ;;  %v94_v39 = vsub.f32 1.0, %v93_v36  ;;  %v250_v14 = vpop.eup %249 }
  0xa1   :  { %v91_v40 = vsel %vm88_vm4, %v90_v33, %v86_v37 }
  0xa2   :  { %v106_v42 = vmul.f32 1.0614054, %v91_v40  ;;  %v95_v43 = vmul.f32 %v246_v34, %v94_v39 }
  0xa4   :  { %v108_v45 = vadd.f32 -1.4531521, %v106_v42  ;;  %v96_v47 = vadd.f32 %v246_v34, %v95_v43 }
  0xa6   :  { %v110_v49 = vmul.f32 %v108_v45, %v91_v40  ;;  %v100_v50 = vsel %vm99_vm7, %v246_v34, %v96_v47 }
  0xa7   :  { %v105_v54 = vsel %vm102_vm8, %v104_v48, %v100_v50 }
  0xa8   :  { %v112_v53 = vadd.f32 1.4214138, %v110_v49  ;;  %v107_v56 = vmul.f32 1.0614054, %v105_v54 }
  0xaa   :  { %v114_v57 = vmul.f32 %v112_v53, %v91_v40  ;;  %v109_v58 = vadd.f32 -1.4531521, %v107_v56 }
  0xac   :  { %v116_v60 = vadd.f32 -0.28449672, %v114_v57  ;;  %v111_v61 = vmul.f32 %v109_v58, %v105_v54 }
  0xae   :  { %v118_v62 = vmul.f32 %v116_v60, %v91_v40  ;;  %v113_v63 = vadd.f32 1.4214138, %v111_v61 }
  0xb0   :  { %v120_v1 = vadd.f32 0.2548296, %v118_v62  ;;  %v115_v2 = vmul.f32 %v113_v63, %v105_v54 }
  0xb2   :  { %v122_v3 = vmul.f32 %v120_v1, %v91_v40  ;;  %v117_v5 = vadd.f32 -0.28449672, %v115_v2 }
  0xb4   :  { %v132_v6 = vmul.f32 %v248_v4, %v122_v3  ;;  %v119_v7 = vmul.f32 %v117_v5, %v105_v54 }
  0xb6   :  { %v134_v8 = vsub.f32 1.0, %v132_v6  ;;  %v121_v9 = vadd.f32 0.2548296, %v119_v7 }
  0xb8   :  { %v138_v10 = vsub.f32 0.0, %v134_v8  ;;  %v123_v12 = vmul.f32 %v121_v9, %v105_v54 }
  0xba   :  { %v140_v15 = vsel %vm136_vm9, %v138_v10, %v134_v8  ;;  %v133_v18 = vmul.f32 %v250_v14, %v123_v12 }
  0xbb   :  { %v142_v17 = vadd.f32 1.0, %v140_v15 }
  0xbc   :  { %v135_v21 = vsub.f32 1.0, %v133_v18 }
  0xbd   :  { %v144_v20 = vmul.f32 %v142_v17, %v68_v16 }
  0xbe   :  { %v139_v23 = vsub.f32 0.0, %v135_v21 }
  0xbf   :  { %223 = vmatmul.msk.f32.vlgmr.msra.gmra.mxu1 %vm156_vm10, %v144_v20 }
  0xc0   :  { %v141_v24 = vsel %vm137_vm11, %v139_v23, %v135_v21 }
  0xc1   :  { %v143_v26 = vadd.f32 1.0, %v141_v24 }
  0xc3   :  { %v145_v27 = vmul.f32 %v143_v26, %v69_v25 }
  0xc5   :  { %224 = vmatmul.msk.f32.vlgmr.msra.gmra.mxu2 %vm156_vm10, %v145_v27 }
 0x13c   :  { %v180_v28 = vpop.f32.mrf.mxu1 }
 0x13d   :  { %v186_v29 = vadd.f32 %v180_v28, %v146_v13 }
 0x13f   :  { %188 = vst.msk [vmem:[#allocation2] sm:$0xff] %vm25_vm0, %v186_v29 }
 0x146   :  { %v193_v30 = vld [vmem:[#allocation2] sm:$0xff] }
 0x147   :  { %v199_v31 = vadd.f32 %v242_v11, %v193_v30 }
 0x148   :  { %v183_v22 = vpop.f32.mrf.mxu2 }
 0x149   :  { %201 = vst.msk [vmem:[#allocation2] sm:$0xff] %vm25_vm0, %v199_v31  ;;  %v187_v33 = vadd.f32 %v183_v22, %v147_v32 }
 0x14b   :  { %189 = vst.msk [vmem:[#allocation2 + $0x8] sm:$0xff] %vm25_vm0, %v187_v33 }
 0x152   :  { %v194_v19 = vld [vmem:[#allocation2 + $0x8] sm:$0xff] }
 0x153   :  { %v200_v34 = vadd.f32 %v242_v11, %v194_v19 }
 0x155   :  { %202 = vst.msk [vmem:[#allocation2 + $0x8] sm:$0xff] %vm25_vm0, %v200_v34 }
 0x156   :  { %215 = dma.vmem_to_hbm [thread:$0]  %s208_s22, 256, %s210_s25, [#allocation3], %s279_s4, %s279_s4, %s280_s26  }
 0x157   :  { %275 = dma.done.wait [#allocation3], 256  }
 0x158   :  { %276 = vsyncadd [#allocation3], 4294967040 }
 0x159   :  { %220 = vsyncpa [#allocation3], 1 }

</bundles_post_ra>
